<compile_context>
chip_gen: v7x
topology: tpu7x:2x2x1
jax: 0.10.0
libtpu: 0.0.40
codegen_flags: <defaults>
</compile_context>

<pallas_src>
import functools

import numpy as np
import jax
import jax.numpy as jnp
from jax.experimental import pallas as pl
from jax.experimental.pallas import tpu as pltpu


# --------------------------------------------------------------------------- #
# Kernel
# --------------------------------------------------------------------------- #
def _lambda_kernel(x_ref, s_ref, o_ref, *, b_blk, c_in, c_out, pad):
    """One batch block.

    x_ref : (b_blk*c_in,  H*W)    lane-dense input slab
    s_ref : (H*W,         Ho*Wo)  0/1 stride-2 spatial selection (constant)
    o_ref : (b_blk*c_out, Ho*Wo)  lane-dense output slab
    """
    # Stride-2 spatial subsample as a single MXU matmul (exact: S is 0/1).
    z = jnp.dot(x_ref[...], s_ref[...], preferred_element_type=jnp.float32)
    z = z.astype(o_ref.dtype)

    if pad == 0:
        o_ref[...] = z
    else:
        # Channel zero-pad via direct offset stores (no second matmul).
        o_ref[...] = jnp.zeros_like(o_ref)
        for j in range(b_blk):  # small static unroll (b_blk capped at 32)
            o_ref[pl.ds(j * c_out + pad, c_in), :] = z[j * c_in:(j + 1) * c_in, :]


# --------------------------------------------------------------------------- #
# Host-side constants & sizing helpers
# --------------------------------------------------------------------------- #
@functools.lru_cache(maxsize=None)
def _stride2_selection(H, W, dtype_name):
    """S[(2h)*W + 2w, h*Wo + w] = 1  — built on the host, cached per shape."""
    Ho, Wo = (H + 1) // 2, (W + 1) // 2
    s = np.zeros((H * W, Ho * Wo), dtype=dtype_name)
    hh = np.arange(Ho)
    ww = np.arange(Wo)
    src = ((2 * hh)[:, None] * W + 2 * ww[None, :]).reshape(-1)
    dst = (hh[:, None] * Wo + ww[None, :]).reshape(-1)
    s[src, dst] = 1
    return s


def _vmem_capacity_bytes():
    try:
        return int(pltpu.get_tpu_info().vmem_capacity_bytes)
    except Exception:
        return 64 * 1024 * 1024  # conservative: smallest current gen (v7x)


def _min_sublane(itemsize):
    return {4: 8, 2: 16, 1: 32}.get(itemsize, 8)


def _block_bytes(d, C_in, C_out, HW, HoWo, itemsize):
    blk_in = d * C_in * HW * itemsize
    blk_out = d * C_out * HoWo * itemsize
    z_f32 = d * C_in * HoWo * 4          # f32 matmul result + cast copy
    s_bytes = HW * HoWo * itemsize        # constant selection matrix
    return 2 * (blk_in + blk_out) + 2 * s_bytes + 3 * z_f32


def _pick_batch_block(B, C_in, C_out, HW, HoWo, itemsize):
    sublane = _min_sublane(itemsize)
    budget = 0.45 * _vmem_capacity_bytes()   # per-generation VMEM budget

    cands = []
    for d in range(1, B + 1):
        if B % d:
            continue
        aligned = (d * C_in) % sublane == 0 and (d * C_out) % sublane == 0
        if not (aligned or d == B):
            continue
        if _block_bytes(d, C_in, C_out, HW, HoWo, itemsize) > budget:
            continue
        cands.append(d)
    if not cands:
        return 1                                   # smallest correct block, never oversized
    multi = [d for d in cands if B // d >= 2]      # keep >=2 grid steps (dual-TC v7x)
    pool = multi if multi else cands
    small = [d for d in pool if d <= 32] or pool   # bound the unrolled store loop
    return max(small)


# --------------------------------------------------------------------------- #
# Wrapper
# --------------------------------------------------------------------------- #
def lambda_layer(x, pad):
    """x: (B, C_in, H, W)  ->  (B, C_in + 2*pad, ceil(H/2), ceil(W/2))."""
    B, C_in, H, W = x.shape
    Ho, Wo = (H + 1) // 2, (W + 1) // 2
    C_out = C_in + 2 * pad
    HW, HoWo = H * W, Ho * Wo
    dt = x.dtype
    itemsize = jnp.dtype(dt).itemsize

    b_blk = _pick_batch_block(B, C_in, C_out, HW, HoWo, itemsize)
    n_steps = B // b_blk

    # Host-side constant (no per-call device scatter kernels).
    s_sel = _stride2_selection(H, W, np.dtype(dt).name)

    # Free, contiguous wrapper reshape -> lane-dense 2-D slabs at the boundary.
    x2 = x.reshape(B * C_in, HW)

    kernel = functools.partial(_lambda_kernel,
                               b_blk=b_blk, c_in=C_in, c_out=C_out, pad=pad)

    # Scoped-VMEM limit from the actual footprint, with headroom, capped at
    # 75% of this generation's physical VMEM (v7x 64 MiB, v5e/v6e 128 MiB).
    need = _block_bytes(b_blk, C_in, C_out, HW, HoWo, itemsize)
    compiler_kwargs = {}
    if need > 12 * 1024 * 1024:
        cap = _vmem_capacity_bytes()
        compiler_kwargs["vmem_limit_bytes"] = int(
            min(1.25 * need + (4 << 20), 0.75 * cap))

    out2 = pl.pallas_call(
        kernel,
        out_shape=jax.ShapeDtypeStruct((B * C_out, HoWo), dt),
        grid=(n_steps,),
        in_specs=[
            pl.BlockSpec((b_blk * C_in, HW), lambda i: (i, 0)),
            pl.BlockSpec((HW, HoWo), lambda i: (0, 0)),   # constant block
        ],
        out_specs=pl.BlockSpec((b_blk * C_out, HoWo), lambda i: (i, 0)),
        compiler_params=pltpu.CompilerParams(
            dimension_semantics=("parallel",), **compiler_kwargs),
    )(x2, jnp.asarray(s_sel))

    return out2.reshape(B, C_out, Ho, Wo)


# --------------------------------------------------------------------------- #
# Self-test
# --------------------------------------------------------------------------- #
if __name__ == "__main__":
    key = jax.random.PRNGKey(0)
    B, C_in, H, W = 2, 4, 16, 16
    planes = 2 * C_in          # typical downsampling block: planes = 2 * in_planes
    pad = planes // 4          # -> pad 2 channels on each side

    x = jax.random.normal(key, (B, C_in, H, W), dtype=jnp.float32)

    y = jax.block_until_ready(lambda_layer(x, pad))

    # Reference (pure JAX) — same semantics as the wrapped PyTorch lambda.
    ref = jnp.pad(x[:, :, ::2, ::2], ((0, 0), (pad, pad), (0, 0), (0, 0)))
    assert y.shape == ref.shape, (y.shape, ref.shape)
    assert jnp.allclose(y, ref, atol=1e-6), "mismatch vs reference"

    # TODO(synk): LambdaLayer wraps an arbitrary Python lambda; only the
    # canonical ResNet-CIFAR option-A shortcut lambda is implemented here.
    print("KERNEL_OK")
</pallas_src>

<mosaic_0001>
module attributes {stable_mosaic.version = 11 : i64} {
  func.func @_lambda_kernel(%arg0: i32, %arg1: memref<8x256xf32, #tpu.memory_space<vmem>>, %arg2: memref<256x64xf32, #tpu.memory_space<vmem>>, %arg3: memref<16x64xf32, #tpu.memory_space<vmem>>) attributes {dimension_semantics = [#tpu.dimension_semantics<parallel>], iteration_bounds = array<i64: 1>, scalar_prefetch = 0 : i64, scratch_operands = 0 : i64, tpu.core_type = #tpu.core_type<tc>, window_params = [{transform_indices = @transform_0, window_bounds = array<i64: 8, 256>}, {pipeline_mode = #tpu.pipeline_mode<synchronous>, transform_indices = @transform_1, window_bounds = array<i64: 256, 64>}, {transform_indices = @transform_2, window_bounds = array<i64: 16, 64>}]} {
    %c0 = arith.constant 0 : index
    %c0_0 = arith.constant 0 : index
    %0 = vector.load %arg1[%c0, %c0_0] : memref<8x256xf32, #tpu.memory_space<vmem>>, vector<8x256xf32>
    %c0_1 = arith.constant 0 : index
    %c0_2 = arith.constant 0 : index
    %1 = vector.load %arg2[%c0_1, %c0_2] : memref<256x64xf32, #tpu.memory_space<vmem>>, vector<256x64xf32>
    %cst = arith.constant dense<0.000000e+00> : vector<8x64xf32>
    %2 = tpu.matmul %0, %1, %cst {dimension_numbers = #tpu.dot_dimension_numbers<[1], [0], [0], [1], [0, 0, 1, 1], [], []>} : vector<8x256xf32>, vector<256x64xf32>, vector<8x64xf32> -> vector<8x64xf32>
    %cst_3 = arith.constant 0.000000e+00 : f32
    %3 = vector.broadcast %cst_3 : f32 to vector<16x64xf32>
    %c0_4 = arith.constant 0 : index
    %c0_5 = arith.constant 0 : index
    %4 = vector.load %arg3[%c0_4, %c0_5] : memref<16x64xf32, #tpu.memory_space<vmem>>, vector<16x64xf32>
    tpu.vector_store %arg3[%c0_4, %c0_5], %3 {strides = array<i32>} : memref<16x64xf32, #tpu.memory_space<vmem>>, vector<16x64xf32>,
    %5 = vector.extract_strided_slice %2 {offsets = [0, 0], sizes = [4, 64], strides = [1, 1]} : vector<8x64xf32> to vector<4x64xf32>
    %c2 = arith.constant 2 : index
    %c0_6 = arith.constant 0 : index
    %6 = vector.load %arg3[%c2, %c0_6] : memref<16x64xf32, #tpu.memory_space<vmem>>, vector<4x64xf32>
    tpu.vector_store %arg3[%c2, %c0_6], %5 {strides = array<i32>} : memref<16x64xf32, #tpu.memory_space<vmem>>, vector<4x64xf32>,
    %7 = vector.extract_strided_slice %2 {offsets = [4, 0], sizes = [4, 64], strides = [1, 1]} : vector<8x64xf32> to vector<4x64xf32>
    %c10 = arith.constant 10 : index
    %c0_7 = arith.constant 0 : index
    %8 = vector.load %arg3[%c10, %c0_7] : memref<16x64xf32, #tpu.memory_space<vmem>>, vector<4x64xf32>
    tpu.vector_store %arg3[%c10, %c0_7], %7 {strides = array<i32>} : memref<16x64xf32, #tpu.memory_space<vmem>>, vector<4x64xf32>,
    return
  }
  func.func @transform_0(%arg0: i32) -> (i32, i32) {
    %c0_i32 = arith.constant 0 : i32
    %c0_i32_0 = arith.constant 0 : i32
    return %arg0, %c0_i32 : i32, i32
  }
  func.func @transform_1(%arg0: i32) -> (i32, i32) {
    %c0_i32 = arith.constant 0 : i32
    %c0_i32_0 = arith.constant 0 : i32
    %c0_i32_1 = arith.constant 0 : i32
    return %c0_i32, %c0_i32_0 : i32, i32
  }
  func.func @transform_2(%arg0: i32) -> (i32, i32) {
    %c0_i32 = arith.constant 0 : i32
    %c0_i32_0 = arith.constant 0 : i32
    return %arg0, %c0_i32 : i32, i32
  }
}

</mosaic_0001>

<bundles_post_ra>
// kernel: tpu_custom_call.1
= control target key start
LH: loop header
LB: loop body
LE: loop exit
PB: predicated region body
PF: predicated region fallthrough
CT: control target
= control target key end

     0   :  { %s367_s0 = inlined_call_operand.vmem [shape: f32[8,256], index: 0, kind: input, shape index: {}]   ;;  %s368_s1 = inlined_call_operand.vmem [shape: f32[256,64], index: 1, kind: input, shape index: {}]   ;;  %s369_s2 = inlined_call_operand.hbm [shape: f32[16,64], index: 2, kind: output, shape index: {}]  }
   0x1   :  { %v30_v0 = vld [vmem:[%s368_s1 + $0x80] sm:$0xff]  ;;  %v31_v1 = vld [vmem:[%s368_s1 + $0x88] sm:$0xff]  ;;  %v32_v5 = vld [vmem:[%s368_s1 + $0x90] sm:$0xff] }
   0x2   :  { %v14_v2 = vld [vmem:[%s368_s1] sm:$0xff]  ;;  %v174_v3 = vpack.c.bf16 %v31_v1, %v30_v0  ;;  %v15_v4 = vld [vmem:[%s368_s1 + $0x8] sm:$0xff]  ;;  %v33_v6 = vld [vmem:[%s368_s1 + $0x98] sm:$0xff] }
   0x3   :  { %v176_v7 = vpack.c.bf16 %v15_v4, %v14_v2  ;;  %v178_v8 = vpack.c.bf16 %v33_v6, %v32_v5  ;;  %v16_v9 = vld [vmem:[%s368_s1 + $0x10] sm:$0xff]  ;;  %v17_v10 = vld [vmem:[%s368_s1 + $0x18] sm:$0xff]  ;;  %v34_v11 = vld [vmem:[%s368_s1 + $0xa0] sm:$0xff] }
   0x4   :  { %175 = vmatprep.subr.bf16.mxu0 %v174_v3  ;;  %v35_v12 = vld [vmem:[%s368_s1 + $0xa8] sm:$0xff]  ;;  %v180_v13 = vpack.c.bf16 %v17_v10, %v16_v9  ;;  %v18_v15 = vld [vmem:[%s368_s1 + $0x20] sm:$0xff]  ;;  %v36_v17 = vld [vmem:[%s368_s1 + $0xb0] sm:$0xff] }
   0x5   :  { %177 = vmatpush3.bf16.msra.mxu0 %v176_v7  ;;  %v182_v14 = vpack.c.bf16 %v35_v12, %v34_v11  ;;  %v19_v16 = vld [vmem:[%s368_s1 + $0x28] sm:$0xff]  ;;  %v37_v18 = vld [vmem:[%s368_s1 + $0xb8] sm:$0xff]  ;;  %v20_v21 = vld [vmem:[%s368_s1 + $0x30] sm:$0xff] }
   0x6   :  { %179 = vmatprep.subr.bf16.mxu0 %v178_v8  ;;  %v184_v19 = vpack.c.bf16 %v19_v16, %v18_v15  ;;  %v186_v20 = vpack.c.bf16 %v37_v18, %v36_v17  ;;  %v21_v22 = vld [vmem:[%s368_s1 + $0x38] sm:$0xff]  ;;  %v38_v23 = vld [vmem:[%s368_s1 + $0xc0] sm:$0xff]  ;;  %v39_v24 = vld [vmem:[%s368_s1 + $0xc8] sm:$0xff] }
   0x7   :  { %v13_v25 = vld [vmem:[%s367_s0 + $0x8] sm:$0xff] }
   0x8   :  { %110 = vmatprep.mubr.f32.mxu0 %v13_v25 }
   0x9   :  { %181 = vmatpush3.bf16.msra.mxu0 %v180_v13 }
   0xa   :  { %183 = vmatprep.subr.bf16.mxu0 %v182_v14 }
   0xb   :  { %7 = vsyncpa [#allocation3], 0  ;;  %v188_v26 = vpack.c.bf16 %v21_v22, %v20_v21  ;;  %v190_v27 = vpack.c.bf16 %v39_v24, %v38_v23  ;;  %v22_v28 = vld [vmem:[%s368_s1 + $0x40] sm:$0xff]  ;;  %v23_v29 = vld [vmem:[%s368_s1 + $0x48] sm:$0xff]  ;;  %vm116_vm0 = vcmask 523264   ;;  %v234_v50 = vmov 0.0  }
   0xc   :  { %v40_v30 = vld [vmem:[%s368_s1 + $0xd0] sm:$0xff]  ;;  %v41_v31 = vld [vmem:[%s368_s1 + $0xd8] sm:$0xff]  ;;  %v192_v32 = vpack.c.bf16 %v23_v29, %v22_v28  ;;  %v42_v36 = vld [vmem:[%s368_s1 + $0xe0] sm:$0xff]  ;;  %117 = vst.msk [vmem:[#allocation2] sm:$0xff] %vm116_vm0, %v234_v50  ;;  %s235_s21 = smov [#allocation2]   ;;  %vm119_vm1 = vcmask 519168  }
   0xd   :  { %185 = vmatpush3.bf16.msra.mxu0 %v184_v19  ;;  %v194_v33 = vpack.c.bf16 %v41_v31, %v40_v30  ;;  %v24_v34 = vld [vmem:[%s368_s1 + $0x50] sm:$0xff]  ;;  %v25_v35 = vld [vmem:[%s368_s1 + $0x58] sm:$0xff]  ;;  %v43_v37 = vld [vmem:[%s368_s1 + $0xe8] sm:$0xff]  ;;  %118 = vst.msk [vmem:[#allocation2 + $0x8] sm:$0xff] %vm116_vm0, %v234_v50  ;;  %s128_s22 = sshll.u32 %s235_s21, 4  ;;  %vm121_vm2 = vcmask 523268   ;;  %s129_s22 = int_to_ptr.vmem [resolvable:$true] %s128_s22 }
   0xe   :  { %187 = vmatprep.subr.bf16.mxu0 %v186_v20  ;;  %v196_v38 = vpack.c.bf16 %v25_v35, %v24_v34  ;;  %v198_v39 = vpack.c.bf16 %v43_v37, %v42_v36  ;;  %v26_v40 = vld [vmem:[%s368_s1 + $0x60] sm:$0xff]  ;;  %v27_v41 = vld [vmem:[%s368_s1 + $0x68] sm:$0xff]  ;;  %v44_v42 = vld [vmem:[%s368_s1 + $0xf0] sm:$0xff]  ;;  %p215_p1 = scmp.lt.s32.totalorder %s129_s22, %s129_s22 }
   0xf   :  { %v45_v43 = vld [vmem:[%s368_s1 + $0xf8] sm:$0xff]  ;;  %v200_v44 = vpack.c.bf16 %v27_v41, %v26_v40  ;;  %v28_v46 = vld [vmem:[%s368_s1 + $0x70] sm:$0xff]  ;;  %v12_v49 = vld [vmem:[%s367_s0] sm:$0xff] }
  0x10   :  { %v202_v45 = vpack.c.bf16 %v45_v43, %v44_v42  ;;  %v29_v47 = vld [vmem:[%s368_s1 + $0x78] sm:$0xff]  ;;  %s210_s1 = scalar_lea.vmem %s129_s22, 256 }
  0x11   :  { %189 = vmatpush3.bf16.msra.mxu0 %v188_v26  ;;  %v204_v48 = vpack.c.bf16 %v29_v47, %v28_v46  ;;  %p211_p0 = scmp.ne.s32.totalorder %s129_s22, %s210_s1  ;;  %p216_p2 = scmp.lt.s32.totalorder %s210_s1, %s210_s1 }
  0x12   :  { %191 = vmatprep.subr.bf16.mxu0 %v190_v27 }
  0x13   :  { %p217_p3 = por %p216_p2, %p215_p1 }
  0x15   :  { %193 = vmatpush3.bf16.msra.mxu0 %v192_v32  ;;  %p218_p4 = pnand %p217_p3, %p211_p0 }
  0x16   :  { %195 = vmatprep.subr.bf16.mxu0 %v194_v33 }
  0x19   :  { %197 = vmatpush3.bf16.msra.mxu0 %v196_v38 }
  0x1a   :  { %199 = vmatprep.subr.bf16.mxu0 %v198_v39 }
  0x1d   :  { %201 = vmatpush3.bf16.msra.mxu0 %v200_v44 }
  0x1e   :  { %203 = vmatprep.subr.bf16.mxu0 %v202_v45 }
  0x21   :  { %205 = vmatpush3.bf16.msra.mxu0 %v204_v48 }
  0x24   :  { %111 = vmatmul.mubr.f32.vlgmr.msra.gmra.mrb[0].mxu0 %v12_v49 }
  0xf7   :  { %v171_v51 = vpop.f32.mrb[0].mxu0 }
  0xf8   :  { %v172_v52 = vpop.f32.mrb[1].mxu0 }
  0xf9   :  { %v173_v53 = vadd.f32 %v172_v52, %v171_v51 }
  0xfb   :  { %120 = vst.msk [vmem:[#allocation2 + $0x2] sm:$0xf] %vm119_vm1, %v173_v53 }
  0xfc   :  { %122 = vst.msk [vmem:[#allocation2 + $0x6] sm:$0xf0] %vm121_vm2, %v173_v53 }
  0xfd   :  { %221 = shalt.err (!%p218_p4)
}
  0xfe   :  { %s222_s24 = scalar_lea.hbm %s369_s2, 256 }
  0xff   :  { %p223_p5 = scmp.ne.s32.totalorder %s369_s2, %s222_s24  ;;  %p226_p6 = scmp.lt.u32.totalorder %s222_s24, %s369_s2 }
 0x101   :  { %p228_p7 = pnand %p226_p6, %p223_p5 }
 0x103   :  { %231 = shalt.err (!%p228_p7)
}
 0x104   :  { %s236_s29 = smov 128   ;;  %s237_s30 = smov 8  }
 0x105   :  { %134 = dma.vmem_to_hbm [thread:$0]  %s129_s22, 256, %s369_s2, [#allocation3], %s236_s29, %s236_s29, %s237_s30  }
 0x106   :  { %232 = dma.done.wait [#allocation3], 256  }
 0x107   :  { %233 = vsyncadd [#allocation3], 4294967040 }
 0x108   :  { %138 = vsyncpa [#allocation3], 1 }

</bundles_post_ra>
